<compile_context>
chip_gen: v5e
topology: v5e:2x2
jax: 0.10.0
libtpu: 0.0.40
codegen_flags: <defaults>
</compile_context>

<pallas_src>
import functools

import jax
import jax.numpy as jnp
from jax.experimental import pallas as pl
from jax.experimental.pallas import tpu as pltpu


# ---------------------------------------------------------------------------
# Gate math shared by both paths: SE bottleneck + k-tap channel conv +
# sigmoids, all on a tiny (C, 1) pooled vector (channels on sublanes).
# ---------------------------------------------------------------------------
def _gate_from_pooled(pooled, w1_ref, w2_ref, wc_ref, *, k_size, channels):
    C = channels
    # HIGHEST keeps the tiny (.,1) matvecs numerically f32-exact; at (C,1)
    # the extra MXU passes are a handful of cycles and fully hidden by DMA.
    hi = jax.lax.Precision.HIGHEST

    h = jnp.dot(w1_ref[...], pooled, precision=hi,
                preferred_element_type=jnp.float32)                 # (C//r, 1)
    h = jnp.maximum(h, 0.0)
    s = jnp.dot(w2_ref[...], h, precision=hi,
                preferred_element_type=jnp.float32)                 # (C, 1)
    s = jax.nn.sigmoid(s)

    # k-tap 1-D conv along channels with zero padding:
    #   conv[c] = sum_j w[j] * s[c + j - pad],  pad = (k-1)//2
    # implemented as k static sublane shifts of the (C,1) vector (O(k*C) work,
    # no (C,C) temporaries).  8-aligned zero margins keep the concat aligned.
    pad = (k_size - 1) // 2
    off = ((k_size + 7) // 8) * 8
    zmargin = jnp.zeros((off, 1), jnp.float32)
    sp = jnp.concatenate([zmargin, s, zmargin], axis=0)             # (C + 2*off, 1)
    base = off - pad
    conv = wc_ref[0] * sp[base:base + C, :]
    for j in range(1, k_size):
        conv = conv + wc_ref[j] * sp[base + j:base + j + C, :]
    return jax.nn.sigmoid(conv)                                     # (C, 1) f32


# ---------------------------------------------------------------------------
# Fused single-pass kernel: one grid step per batch, full (C, HW) tile.
# ---------------------------------------------------------------------------
def _sea_fused_kernel(x_ref, w1_ref, w2_ref, wc_ref, o_ref, *,
                      k_size, inv_hw, channels):
    # 1) Global average pool: f32 lane reduction over the spatial axis.
    pooled = jnp.sum(x_ref[...], axis=-1, keepdims=True,
                     dtype=jnp.float32) * inv_hw                    # (C, 1)
    # 2-3) Gate math on the pooled vector only.
    gate = _gate_from_pooled(pooled, w1_ref, w2_ref, wc_ref,
                             k_size=k_size, channels=channels)
    # 4) Gated multiply in the input dtype, broadcast over lanes.
    #    (For bf16/fp16 inputs the f32 gate is rounded to the input dtype.)
    o_ref[...] = x_ref[...] * gate.astype(o_ref.dtype)


# ---------------------------------------------------------------------------
# HW-split fallback, pass 1: per-(batch, channel) spatial sums, accumulated
# over lane-dense HW chunks (HW axis is a reduction -> "arbitrary").
# ---------------------------------------------------------------------------
def _sea_pool_kernel(x_ref, sum_ref, *, t_hw, hw):
    h = pl.program_id(1)

    @pl.when(h == 0)
    def _():
        sum_ref[...] = jnp.zeros_like(sum_ref)

    x = x_ref[...]                                                  # (C, t_hw)
    if hw % t_hw != 0:
        # Mask the ragged tail of the final (clipped) block: its OOB lanes
        # contain undefined data that must not enter the sum.
        lane = jax.lax.broadcasted_iota(jnp.int32, x.shape, 1) + h * t_hw
        x = jnp.where(lane < hw, x, 0)
    sum_ref[...] += jnp.sum(x, axis=-1, keepdims=True, dtype=jnp.float32)


# ---------------------------------------------------------------------------
# HW-split fallback, pass 2: gated multiply over lane-dense HW chunks.  The
# (C,1) gate is recomputed per step (tiny, hidden under the tile DMA) so both
# grid axes can stay "parallel" (keeps both v7x TensorCores busy even at B=1).
# ---------------------------------------------------------------------------
def _sea_mul_kernel(pooled_ref, w1_ref, w2_ref, wc_ref, x_ref, o_ref, *,
                    k_size, inv_hw, channels):
    pooled = pooled_ref[...] * inv_hw                               # (C, 1) f32
    gate = _gate_from_pooled(pooled, w1_ref, w2_ref, wc_ref,
                             k_size=k_size, channels=channels)
    o_ref[...] = x_ref[...] * gate.astype(o_ref.dtype)


# ---------------------------------------------------------------------------
# Wrapper
# ---------------------------------------------------------------------------
def sea_forward(x, fc1_w, fc2_w, conv_w, k_size=3, *,
                force_split=False, split_hw_tile=None):
    """x: (B,C,H,W); fc1_w: (C//r, C); fc2_w: (C, C//r); conv_w: (1,1,k)."""
    B, C, H, W = x.shape
    HW = H * W
    Cr = fc1_w.shape[0]

    x3 = x.reshape(B, C, HW)                        # free (contiguous) reshape
    w1 = fc1_w.astype(jnp.float32)
    w2 = fc2_w.astype(jnp.float32)
    wc = conv_w.reshape(-1).astype(jnp.float32)     # (k,) scalar taps -> SMEM

    itemsize = x.dtype.itemsize
    weight_bytes = 2 * C * Cr * 4                   # fc1 + fc2 in f32

    # Generation-aware VMEM budget (~48 MiB on v7x, ~96 MiB on v5e/v6e).
    try:
        vmem_cap = int(pltpu.get_tpu_info().vmem_capacity_bytes)
    except Exception:                               # no TPU info available
        vmem_cap = 128 << 20
    vmem_budget = (vmem_cap * 3) // 4               # headroom for compiler scratch

    # Fused path: 2x double-buffered in + out (C, HW) tiles, double-buffered
    # weight blocks and a little slack for the (C,1)-sized gate temporaries.
    tile_bytes = C * HW * itemsize
    fused_need = 4 * tile_bytes + 2 * weight_bytes + 16 * C * 4 + (2 << 20)
    use_fused = (fused_need <= vmem_budget) and not force_split

    # v7x has 2 TensorCores (and 64 MiB VMEM): a B-only grid idles one core
    # for B == 1 inference, so prefer the HW-split path (parallel HW axis)
    # for large single-image feature maps on small-VMEM chips.
    if B == 1 and HW >= 4096 and vmem_cap <= (64 << 20):
        use_fused = False

    if use_fused:
        kernel = functools.partial(_sea_fused_kernel, k_size=k_size,
                                   inv_hw=1.0 / HW, channels=C)
        vmem_limit = int(min(max(fused_need, 16 << 20), vmem_budget))
        out = pl.pallas_call(
            kernel,
            out_shape=jax.ShapeDtypeStruct((B, C, HW), x.dtype),
            grid_spec=pl.GridSpec(
                grid=(B,),
                in_specs=[
                    pl.BlockSpec((None, C, HW), lambda b: (b, 0, 0)),   # x tile
                    pl.BlockSpec((Cr, C), lambda b: (0, 0)),            # fc1 weight
                    pl.BlockSpec((C, Cr), lambda b: (0, 0)),            # fc2 weight
                    pl.BlockSpec(memory_space=pltpu.MemorySpace.SMEM),  # conv taps
                ],
                out_specs=pl.BlockSpec((None, C, HW), lambda b: (b, 0, 0)),
            ),
            compiler_params=pltpu.CompilerParams(
                dimension_semantics=("parallel",),
                vmem_limit_bytes=vmem_limit,
            ),
        )(x3, w1, w2, wc)
        return out.reshape(B, C, H, W)

    # ------------------- HW-split two-pass fallback -------------------
    # Lane-dense HW chunk (multiple of 128) sized so the multiply pass fits.
    if split_hw_tile is not None:
        t_hw = int(split_hw_tile)
    else:
        t_hw = 2048
        while t_hw > 256 and (4 * C * t_hw * itemsize + 2 * weight_bytes
                              + (2 << 20)) > vmem_budget:
            t_hw //= 2
    t_hw = max(128, min(t_hw, pl.cdiv(HW, 128) * 128))
    n_hw = pl.cdiv(HW, t_hw)

    # Pass 1: pooled spatial sums (accumulator over HW chunks).
    pool_kernel = functools.partial(_sea_pool_kernel, t_hw=t_hw, hw=HW)
    pool_vmem = int(min(max(2 * C * t_hw * itemsize + (2 << 20), 16 << 20),
                        vmem_budget))
    sums = pl.pallas_call(
        pool_kernel,
        out_shape=jax.ShapeDtypeStruct((B, C, 1), jnp.float32),
        grid_spec=pl.GridSpec(
            grid=(B, n_hw),
            in_specs=[pl.BlockSpec((None, C, t_hw), lambda b, h: (b, 0, h))],
            out_specs=pl.BlockSpec((None, C, 1), lambda b, h: (b, 0, 0)),
        ),
        compiler_params=pltpu.CompilerParams(
            dimension_semantics=("parallel", "arbitrary"),
            vmem_limit_bytes=pool_vmem,
        ),
    )(x3)

    # Pass 2: gate + broadcast multiply over lane-dense HW chunks.
    mul_kernel = functools.partial(_sea_mul_kernel, k_size=k_size,
                                   inv_hw=1.0 / HW, channels=C)
    mul_vmem = int(min(max(4 * C * t_hw * itemsize + 2 * weight_bytes
                           + (2 << 20), 16 << 20), vmem_budget))
    out = pl.pallas_call(
        mul_kernel,
        out_shape=jax.ShapeDtypeStruct((B, C, HW), x.dtype),
        grid_spec=pl.GridSpec(
            grid=(B, n_hw),
            in_specs=[
                pl.BlockSpec((None, C, 1), lambda b, h: (b, 0, 0)),     # pooled sums
                pl.BlockSpec((Cr, C), lambda b, h: (0, 0)),             # fc1 weight
                pl.BlockSpec((C, Cr), lambda b, h: (0, 0)),             # fc2 weight
                pl.BlockSpec(memory_space=pltpu.MemorySpace.SMEM),      # conv taps
                pl.BlockSpec((None, C, t_hw), lambda b, h: (b, 0, h)),  # x chunk
            ],
            out_specs=pl.BlockSpec((None, C, t_hw), lambda b, h: (b, 0, h)),
        ),
        compiler_params=pltpu.CompilerParams(
            dimension_semantics=("parallel", "parallel"),
            vmem_limit_bytes=mul_vmem,
        ),
    )(sums, w1, w2, wc, x3)
    return out.reshape(B, C, H, W)


# ---------------------------------------------------------------------------
# Pure-JAX reference mirroring the PyTorch SEA_Layer forward exactly.
# ---------------------------------------------------------------------------
def sea_ref(x, fc1_w, fc2_w, conv_w, k_size=3):
    B, C, H, W = x.shape
    pad = (k_size - 1) // 2
    hi = jax.lax.Precision.HIGHEST
    y = jnp.mean(x, axis=(2, 3))                                           # (B, C)
    h = jnp.maximum(jnp.einsum('bc,rc->br', y, fc1_w, precision=hi), 0.0)  # (B, C//r)
    s = jax.nn.sigmoid(jnp.einsum('br,cr->bc', h, fc2_w, precision=hi))    # (B, C)
    w = conv_w.reshape(-1)
    sp = jnp.pad(s, ((0, 0), (pad, pad)))
    conv = sum(w[j] * sp[:, j:j + C] for j in range(k_size))               # (B, C)
    gate = jax.nn.sigmoid(conv)
    return x * gate[:, :, None, None]


if __name__ == "__main__":
    key = jax.random.PRNGKey(0)
    kx_a, kx_b, kx_c, k1, k2, kc = jax.random.split(key, 6)

    B, C, reduction, k_size = 2, 32, 16, 3
    Cr = C // reduction

    # Linear(C, C//r, bias=False) / Linear(C//r, C, bias=False) weights
    # (PyTorch layout: (out_features, in_features)), Conv1d(1,1,k,bias=False).
    fc1_w = jax.random.normal(k1, (Cr, C), jnp.float32) / jnp.sqrt(C)
    fc2_w = jax.random.normal(k2, (C, Cr), jnp.float32) / jnp.sqrt(Cr)
    conv_w = 0.5 * jax.random.normal(kc, (1, 1, k_size), jnp.float32)

    cases = [
        ((16, 16), kx_a, {}),                                        # fused, lane-aligned HW
        ((7, 7), kx_b, {}),                                          # fused, ragged 49-lane tail
        ((20, 20), kx_c, dict(force_split=True, split_hw_tile=256)),  # two-pass split, ragged tile
    ]
    for (H, W), kk, kwargs in cases:
        x = jax.random.normal(kk, (B, C, H, W), dtype=jnp.float32)
        out = jax.block_until_ready(
            sea_forward(x, fc1_w, fc2_w, conv_w, k_size, **kwargs))
        ref = sea_ref(x, fc1_w, fc2_w, conv_w, k_size)
        assert out.shape == x.shape and out.dtype == x.dtype
        assert jnp.allclose(out, ref, atol=1e-5, rtol=1e-5), \
            f"mismatch at {(H, W)} {kwargs}"

    print("KERNEL_OK")
</pallas_src>

<mosaic_0001>
module attributes {stable_mosaic.version = 11 : i64} {
  func.func @_sea_fused_kernel(%arg0: i32, %arg1: memref<1x32x256xf32, #tpu.memory_space<vmem>>, %arg2: memref<2x32xf32, #tpu.memory_space<vmem>>, %arg3: memref<32x2xf32, #tpu.memory_space<vmem>>, %arg4: memref<3xf32, #tpu.memory_space<smem>>, %arg5: memref<1x32x256xf32, #tpu.memory_space<vmem>>) attributes {dimension_semantics = [#tpu.dimension_semantics<parallel>], iteration_bounds = array<i64: 2>, scalar_prefetch = 0 : i64, scratch_operands = 0 : i64, tpu.core_type = #tpu.core_type<tc>, window_params = [{transform_indices = @transform_0, window_bounds = array<i64: 1, 32, 256>}, {pipeline_mode = #tpu.pipeline_mode<synchronous>, transform_indices = @transform_1, window_bounds = array<i64: 2, 32>}, {pipeline_mode = #tpu.pipeline_mode<synchronous>, transform_indices = @transform_2, window_bounds = array<i64: 32, 2>}, {transform_indices = @transform_3, window_bounds = array<i64: 3>}, {transform_indices = @transform_4, window_bounds = array<i64: 1, 32, 256>}]} {
    %c0 = arith.constant 0 : index
    %c0_0 = arith.constant 0 : index
    %c0_1 = arith.constant 0 : index
    %0 = vector.load %arg1[%c0, %c0_0, %c0_1] : memref<1x32x256xf32, #tpu.memory_space<vmem>>, vector<1x32x256xf32>
    %1 = vector.shape_cast %0 : vector<1x32x256xf32> to vector<32x256xf32>
    %cst = arith.constant dense<0.000000e+00> : vector<32xf32>
    %2 = vector.multi_reduction <add>, %1, %cst [1] : vector<32x256xf32> to vector<32xf32>
    %3 = vector.shape_cast %2 : vector<32xf32> to vector<32x1xf32>
    %cst_2 = arith.constant 3.906250e-03 : f32
    %4 = vector.broadcast %cst_2 : f32 to vector<32x1xf32>
    %5 = arith.mulf %3, %4 : vector<32x1xf32>
    %c0_3 = arith.constant 0 : index
    %c0_4 = arith.constant 0 : index
    %6 = vector.load %arg2[%c0_3, %c0_4] : memref<2x32xf32, #tpu.memory_space<vmem>>, vector<2x32xf32>
    %cst_5 = arith.constant dense<0.000000e+00> : vector<2x1xf32>
    %7 = tpu.matmul %6, %5, %cst_5 {dimension_numbers = #tpu.dot_dimension_numbers<[1], [0], [0], [1], [0, 0, 1, 1], [], []>, precision = #tpu.contract_precision<fp32>} : vector<2x32xf32>, vector<32x1xf32>, vector<2x1xf32> -> vector<2x1xf32>
    %cst_6 = arith.constant 0.000000e+00 : f32
    %8 = vector.broadcast %cst_6 : f32 to vector<2x1xf32>
    %9 = arith.maximumf %7, %8 : vector<2x1xf32>
    %c0_7 = arith.constant 0 : index
    %c0_8 = arith.constant 0 : index
    %10 = vector.load %arg3[%c0_7, %c0_8] : memref<32x2xf32, #tpu.memory_space<vmem>>, vector<32x2xf32>
    %cst_9 = arith.constant dense<0.000000e+00> : vector<32x1xf32>
    %11 = tpu.matmul %10, %9, %cst_9 {dimension_numbers = #tpu.dot_dimension_numbers<[1], [0], [0], [1], [0, 0, 1, 1], [], []>, precision = #tpu.contract_precision<fp32>} : vector<32x2xf32>, vector<2x1xf32>, vector<32x1xf32> -> vector<32x1xf32>
    %12 = arith.negf %11 : vector<32x1xf32>
    %13 = math.exp %12 : vector<32x1xf32>
    %cst_10 = arith.constant 1.000000e+00 : f32
    %14 = vector.broadcast %cst_10 : f32 to vector<32x1xf32>
    %15 = arith.addf %14, %13 : vector<32x1xf32>
    %16 = arith.divf %14, %15 : vector<32x1xf32>
    %cst_11 = arith.constant 0.000000e+00 : f32
    %17 = vector.broadcast %cst_11 : f32 to vector<8x1xf32>
    %18 = tpu.concatenate %17, %16, %17 in 0 : vector<8x1xf32>, vector<32x1xf32>, vector<8x1xf32> -> vector<48x1xf32>
    %c0_12 = arith.constant 0 : index
    %19 = memref.load %arg4[%c0_12] : memref<3xf32, #tpu.memory_space<smem>>
    %20 = vector.extract_strided_slice %18 {offsets = [7, 0], sizes = [32, 1], strides = [1, 1]} : vector<48x1xf32> to vector<32x1xf32>
    %21 = vector.broadcast %19 : f32 to vector<32x1xf32>
    %22 = arith.mulf %21, %20 : vector<32x1xf32>
    %c1 = arith.constant 1 : index
    %23 = memref.load %arg4[%c1] : memref<3xf32, #tpu.memory_space<smem>>
    %24 = vector.extract_strided_slice %18 {offsets = [8, 0], sizes = [32, 1], strides = [1, 1]} : vector<48x1xf32> to vector<32x1xf32>
    %25 = vector.broadcast %23 : f32 to vector<32x1xf32>
    %26 = arith.mulf %25, %24 : vector<32x1xf32>
    %27 = arith.addf %22, %26 : vector<32x1xf32>
    %c2 = arith.constant 2 : index
    %28 = memref.load %arg4[%c2] : memref<3xf32, #tpu.memory_space<smem>>
    %29 = vector.extract_strided_slice %18 {offsets = [9, 0], sizes = [32, 1], strides = [1, 1]} : vector<48x1xf32> to vector<32x1xf32>
    %30 = vector.broadcast %28 : f32 to vector<32x1xf32>
    %31 = arith.mulf %30, %29 : vector<32x1xf32>
    %32 = arith.addf %27, %31 : vector<32x1xf32>
    %33 = arith.negf %32 : vector<32x1xf32>
    %34 = math.exp %33 : vector<32x1xf32>
    %cst_13 = arith.constant 1.000000e+00 : f32
    %35 = vector.broadcast %cst_13 : f32 to vector<32x1xf32>
    %36 = arith.addf %35, %34 : vector<32x1xf32>
    %37 = arith.divf %35, %36 : vector<32x1xf32>
    %c0_14 = arith.constant 0 : index
    %c0_15 = arith.constant 0 : index
    %c0_16 = arith.constant 0 : index
    %38 = vector.load %arg1[%c0_14, %c0_15, %c0_16] : memref<1x32x256xf32, #tpu.memory_space<vmem>>, vector<1x32x256xf32>
    %39 = vector.shape_cast %38 : vector<1x32x256xf32> to vector<32x256xf32>
    %40 = vector.broadcast %37 : vector<32x1xf32> to vector<32x256xf32>
    %41 = arith.mulf %39, %40 : vector<32x256xf32>
    %c0_17 = arith.constant 0 : index
    %c0_18 = arith.constant 0 : index
    %c0_19 = arith.constant 0 : index
    %42 = vector.load %arg5[%c0_17, %c0_18, %c0_19] : memref<1x32x256xf32, #tpu.memory_space<vmem>>, vector<1x32x256xf32>
    %43 = vector.shape_cast %42 : vector<1x32x256xf32> to vector<32x256xf32>
    %44 = vector.shape_cast %41 : vector<32x256xf32> to vector<1x32x256xf32>
    tpu.vector_store %arg5[%c0_17, %c0_18, %c0_19], %44 {strides = array<i32>} : memref<1x32x256xf32, #tpu.memory_space<vmem>>, vector<1x32x256xf32>,
    return
  }
  func.func @transform_0(%arg0: i32) -> (i32, i32, i32) {
    %c0_i32 = arith.constant 0 : i32
    %c0_i32_0 = arith.constant 0 : i32
    %c0_i32_1 = arith.constant 0 : i32
    return %arg0, %c0_i32, %c0_i32_0 : i32, i32, i32
  }
  func.func @transform_1(%arg0: i32) -> (i32, i32) {
    %c0_i32 = arith.constant 0 : i32
    %c0_i32_0 = arith.constant 0 : i32
    %c0_i32_1 = arith.constant 0 : i32
    return %c0_i32, %c0_i32_0 : i32, i32
  }
  func.func @transform_2(%arg0: i32) -> (i32, i32) {
    %c0_i32 = arith.constant 0 : i32
    %c0_i32_0 = arith.constant 0 : i32
    %c0_i32_1 = arith.constant 0 : i32
    return %c0_i32, %c0_i32_0 : i32, i32
  }
  func.func @transform_3(%arg0: i32) -> i32 {
    %c0_i32 = arith.constant 0 : i32
    %c0_i32_0 = arith.constant 0 : i32
    return %c0_i32 : i32
  }
  func.func @transform_4(%arg0: i32) -> (i32, i32, i32) {
    %c0_i32 = arith.constant 0 : i32
    %c0_i32_0 = arith.constant 0 : i32
    %c0_i32_1 = arith.constant 0 : i32
    return %arg0, %c0_i32, %c0_i32_0 : i32, i32, i32
  }
}

</mosaic_0001>

<bundles_post_ra>
// kernel: tpu_custom_call.1
= control target key start
LH: loop header
LB: loop body
LE: loop exit
PB: predicated region body
PF: predicated region fallthrough
CT: control target
= control target key end

     0   :  { %s1608_s0 = inlined_call_operand.hbm [shape: f32[2,32,256], index: 0, kind: input, shape index: {}]   ;;  %s1609_s1 = inlined_call_operand.vmem [shape: f32[2,32], index: 1, kind: input, shape index: {}]   ;;  %s1610_s2 = inlined_call_operand.vmem [shape: f32[32,2], index: 2, kind: input, shape index: {}]   ;;  %s1611_s3 = inlined_call_operand.vmem [shape: f32[3], index: 3, kind: input, shape index: {}]   ;;  %s1612_s4 = inlined_call_operand.hbm [shape: f32[2,32,256], index: 4, kind: output, shape index: {}]  }
   0x1   :  { %1613 = sst [smem:[#allocation11_spill]] %s1611_s3 }
   0x2   :  { %9 = vsyncpa [#allocation3], 0 }
   0x3   :  { %11 = vsyncpa [#allocation3 + $0x1], 0 }
   0x4   :  { %12 = vsyncpa [#allocation5], 0 }
   0x5   :  { %13 = vsyncpa [#allocation4], 0 }
   0x6   :  { %15 = vsyncpa [#allocation4 + $0x1], 0  ;;  %s1374_s15 = smov 0   ;;  %s1376_s16 = smov 0  }
   0x7   :  { %s1378_s17 = smov 0   ;;  %s1380_s18 = smov 0  }
   0x8 LB: > { %s1395_s19 = sadd.s32 4294967295, %s1341_s18   ;;  %s1096_s20 = sadd.s32 4294967294, %s1341_s18   ;;  %s1341_s18 = sphi %s1380_s18, %s1625_s18   ;;  %s1337_s17 = sphi %s1378_s17, %s1624_s17   ;;  %s1333_s16 = sphi %s1376_s16, %s1623_s16   ;;  %s1329_s15 = sphi %s1374_s15, %s1622_s15  }
   0x9   : > { %s1399_s21 = sadd.s32 1, %s1341_s18   ;;  %s28_s22 = sadd.s32 1, %s1337_s17 }
   0xa   : > { %s25_s23 = ssub.s32 %s1341_s18, %s1399_s21  ;;  %p35_p0 = scmp.ne.s32.totalorder %s1337_s17, %s1333_s16 }
   0xb   : > { %p26_p1 = scmp.eq.s32.totalorder %s25_s23, 0  ;;  %p36_p2 = scmp.eq.s32.totalorder %s1341_s18, 0 }
   0xc   : > { %p41_p3 = scmp.ne.s32.totalorder %s1333_s16, %s1329_s15  ;;  %p42_p4 = scmp.eq.s32.totalorder %s1395_s19, 0 }
   0xd   : > { %s1411_s24 = scalar_select %p26_p1, %s1337_s17, %s28_s22  }
   0xe   : > { %p1413_p5 = por %p36_p2, %p35_p0  ;;  %p1419_p6 = por %p42_p4, %p41_p3 }
   0xf   : > { %p128_p7 = scmp.eq.s32.totalorder %s1395_s19, 1  ;;  %p134_p8 = scmp.eq.s32.totalorder %s1096_s20, 1 }
  0x10   : > { %p1097_p9 = scmp.ge.s32.totalorder %s1341_s18, 1  ;;  %p141_p10 = scmp.lt.s32.totalorder %s1341_s18, 3 }
  0x11   : > { %p1426_p11 = por %p128_p7, %p35_p0  ;;  %p1430_p12 = por %p134_p8, %p41_p3 }
  0x12   : > { %p1434_p13 = pnand %p1097_p9, %p141_p10  ;;  %s1619_s3 = sld [smem:[#allocation11_spill]] }
  0x13   : > { %p1146_p2 = scmp.lt.s32.totalorder %s1341_s18, 2  ;;  %s170_s7 = sand.u32 1, %s1337_s17  }
  0x14   : > { %p1133_p1 = pneg %p1434_p13  ;;  %s1100_s9 = sshll.u32 %s170_s7, 6 }
  0x15   : > { %p1450_p3 = pnand %p1146_p2, %p1413_p5  ;;  %s1343_s10 = smov [#allocation6]  }
  0x16   : > { %p1134_p7 = pnand %p1133_p1, %p42_p4  ;;  %s1123_s11 = sshll.u32 %s1341_s18, 6 }
  0x17   : > { %s174_s12 = scalar_lea.vmem [#allocation2], %s1100_s9  ;;  %s179_s22 = scalar_lea.hbm %s1608_s0, %s1123_s11 }
  0x18   : > { %s159_s6 = sshll.u32 %s1619_s3, 4  ;;  %s182_s13 = sshll.u32 %s174_s12, 4  ;;  %s160_s6 = int_to_ptr.vmem [resolvable:$true] %s159_s6  ;;  %s183_s13 = int_to_ptr.vmem [resolvable:$true] %s182_s13 }
  0x19   : > { %1136 = dma.vmem_to_smem (!%p1134_p7), %s160_s6, 16, %s1343_s10, [#allocation5]  }
  0x1a   : > { %s180_s23 = sshll.u32 %s179_s22, 4  ;;  %s171_s30 = scalar_lea.sflag [#allocation3], %s170_s7  ;;  %s181_s23 = int_to_ptr.hbm [resolvable:$true] %s180_s23 }
  0x1b   : > { %s1241_s25 = sshra.s32 %s181_s23, 4  ;;  %p1245_p8 = pneg %p1450_p3  ;;  %s1242_s25 = int_to_ptr.hbm [resolvable:$true] %s1241_s25 }
  0x1c   : > { %s1243_s5 = scalar_lea.hbm %s1242_s25, 64  ;;  %s1248_s9 = scalar_lea.hbm %s1608_s0, 128 }
  0x1d   : > { %p1244_p5 = scmp.ne.s32.totalorder %s1242_s25, %s1243_s5  ;;  %p1249_p1 = scmp.lt.s32.totalorder %s1242_s25, %s1608_s0 }
  0x1e   : > { %p1250_p2 = scmp.lt.s32.totalorder %s1248_s9, %s1243_s5 }
  0x1f   : > { %p1246_p9 = pnand %p1245_p8, %p1244_p5 }
  0x20   : > { %p1251_p7 = por %p1250_p2, %p1249_p1 }
  0x21   : > { %p1247_p10 = pneg %p1246_p9 }
  0x23   : > { %p1252_p0 = pnand %p1251_p7, %p1247_p10 }
  0x25   : > { %1255 = shalt.err (!%p1252_p0)
}
  0x26   : > { %s1344_s7 = smov 256   ;;  %s1345_s11 = smov 16  }
  0x27   : > { %1140 = dma.hbm_to_vmem [thread:$0]  (!%p1450_p3), %s181_s23, 1024, %s183_s13, %s171_s30, %s1344_s7, %s1344_s7, %s1345_s11  }
  0x28   : > { %194 = sbr.rel (%p1434_p13) target bundleno = 738 (0x2e2), region = 36  ;;  %s1471_s14 = sand.u32 (!%p1434_p13), 1, %s1333_s16  }
  0x29   : > { %s1104_s3 = sshll.u32 (!%p1434_p13), %s1471_s14, 6  ;;  %s197_s20 = scalar_lea.sflag (!%p1434_p13), [#allocation3], %s1471_s14 }
  0x2a   : > { %s200_s22 = scalar_lea.vmem (!%p1434_p13), [#allocation2], %s1104_s3 }
  0x2d   : > { %1316 = dma.done.wait (%p1419_p6), %s197_s20, 1024  }
  0x2e   : > { %1318 = vsyncadd (%p1419_p6), %s197_s20, 4294966272 }
  0x2f   : > { %1320 = dma.done.wait (%p42_p4), [#allocation5], 16  }
  0x30   : > { %1322 = vsyncadd (%p42_p4), [#allocation5], 4294967280 }
  0x31   : > { %211 = sfence }
  0x32   : > { %v1485_v0 = vld [vmem:[%s200_s22 + $0x30] sm:$0xff]  ;;  %v1487_v1 = vld [vmem:[%s200_s22 + $0x38] sm:$0xff]  ;;  %v1497_v6 = vld [vmem:[%s200_s22 + $0x20] sm:$0xff]  ;;  %vm257_vm0 = vcmask 261120   ;;  %vm451_vm1 = vcmask 15360   ;;  %vm464_vm2 = vcmask 1041408  }
  0x33   : > { %v1489_v2 = vld [vmem:[%s200_s22 + $0x10] sm:$0xff]  ;;  %v249_v3 = vadd.f32 %v1487_v1, %v1485_v0  ;;  %v1493_v4 = vld [vmem:[%s200_s22 + $0x18] sm:$0xff]  ;;  %v1499_v7 = vld [vmem:[%s200_s22 + $0x28] sm:$0xff]  ;;  %s1111_s9 = sld [smem:[#allocation6 + $0x1]]  ;;  %vm800_vm11 = vcmask 1046528   ;;  %vm830_vm13 = vcmask 1045504  }
  0x34   : > { %v243_v5 = vadd.f32 %v1493_v4, %v1489_v2  ;;  %v1501_v8 = vld [vmem:[%s200_s22] sm:$0xff]  ;;  %v1503_v9 = vld [vmem:[%s200_s22 + $0x8] sm:$0xff]  ;;  %v246_v10 = vadd.f32 %v1499_v7, %v1497_v6  ;;  %s1112_s12 = sld [smem:[#allocation6 + $0x2]]  ;;  %s231_s11 = scalar_lea.vmem [#allocation7], %s1104_s3 }
  0x35   : > { %250 = vadd.xlane.f32.xlu0 %v249_v3  ;;  %v240_v11 = vadd.f32 %v1503_v9, %v1501_v8  ;;  %v256_v12 = vld [vmem:[%s1609_s1] sm:$0x3]  ;;  %v448_v54 = vld [vmem:[%s1610_s2 + $0x8] sm:$0xff]  ;;  %v449_v3 = vld [vmem:[%s1610_s2 + $0x10] sm:$0xff]  ;;  %s783_s7 = sld [smem:[#allocation6]]  ;;  %s1124_s20 = sshll.u32 %s1395_s19, 6 }
  0x36   : > { %244 = vadd.xlane.f32.xlu1 %v243_v5  ;;  %v259_v13 = vsel %vm257_vm0, %v256_v12, 0  ;;  %v447_v49 = vld [vmem:[%s1610_s2] sm:$0xff]  ;;  %v456_v58 = vsel %vm451_vm1, %v448_v54, 0  ;;  %s1007_s29 = scalar_lea.hbm %s1612_s4, %s1124_s20  ;;  %s1008_s3 = sshll.u32 %s231_s11, 4  ;;  %s1009_s3 = int_to_ptr.vmem [resolvable:$true] %s1008_s3 }
  0x37   : > { %v281_v14 = vand.u32 4294901760, %v259_v13  ;;  %v453_v51 = vsel %vm451_vm1, %v447_v49, 0  ;;  %v493_v62 = vand.u32 4294901760, %v456_v58  ;;  %s1010_s8 = sshll.u32 %s1007_s29, 4  ;;  %s996_s19 = scalar_lea.sflag [#allocation4], %s1471_s14  ;;  %s1011_s8 = int_to_ptr.hbm [resolvable:$true] %s1010_s8 }
  0x38   : > { %v1516_v53 = vand.u32 4294901760, %v453_v51  ;;  %s1285_s13 = sshra.s32 %s1011_s8, 4  ;;  %s1291_s5 = scalar_lea.hbm %s1612_s4, 128  ;;  %s1286_s13 = int_to_ptr.hbm [resolvable:$true] %s1285_s13 }
  0x39   : > { %v282_v20 = vsub.f32 %v259_v13, %v281_v14  ;;  %v494_v12 = vsub.f32 %v456_v58, %v493_v62  ;;  %v459_v13 = vsel %vm451_vm1, %v449_v3, 0  ;;  %s1287_s23 = scalar_lea.hbm %s1286_s13, 64  ;;  %p1292_p0 = scmp.lt.s32.totalorder %s1286_s13, %s1612_s4 }
  0x3a   : > { %v486_v57 = vsub.f32 %v453_v51, %v1516_v53  ;;  %p1288_p4 = scmp.ne.s32.totalorder %s1286_s13, %s1287_s23  ;;  %p1293_p3 = scmp.lt.s32.totalorder %s1291_s5, %s1287_s23 }
  0x3b   : > { %v283_v24 = vand.u32 4294901760, %v282_v20 }
  0x3c   : > { %v487_v61 = vand.u32 4294901760, %v486_v57  ;;  %p1289_p6 = pnand %p1288_p4, %p1426_p11  ;;  %p1294_p5 = por %p1293_p3, %p1292_p0 }
  0x3d   : > { %247 = vadd.xlane.f32.xlu0 %v246_v10  ;;  %v284_v33 = vsub.f32 %v282_v20, %v283_v24 }
  0x3e   : > { %241 = vadd.xlane.f32.xlu1 %v240_v11  ;;  %v488_v11 = vsub.f32 %v486_v57, %v487_v61  ;;  %p1290_p13 = pneg %p1289_p6 }
  0x3f   : > { %v285_v38 = vand.u32 4294901760, %v284_v33 }
  0x40   : > { %p1295_p8 = pnand %p1294_p5, %p1290_p13 }
  0xa8   : > { %v251_v15 = vpop.xlane.xlu0 %250 }
  0xa9   : > { %v255_v16 = vmul.f32 0.00390625, %v251_v15  ;;  %v245_v17 = vpop.xlane.xlu1 %244 }
  0xaa   : > { %v253_v18 = vmul.f32 0.00390625, %v245_v17  ;;  %v495_v17 = vand.u32 4294901760, %v494_v12 }
  0xab   : > { %v273_v19 = vand.u32 4294901760, %v255_v16 }
  0xac   : > { %v277_v22 = vand.u32 4294901760, %v253_v18 }
  0xad   : > { %v303_v21 = vsub.f32 %v255_v16, %v273_v19  ;;  %274 = vmatpush.msra.mxu0 %v273_v19  ;;  %v489_v16 = vand.u32 4294901760, %v488_v11 }
  0xae   : > { %v315_v26 = vsub.f32 %v253_v18, %v277_v22  ;;  %v501_v18 = vand.u32 4294901760, %v459_v13 }
  0xaf   : > { %v304_v23 = vand.u32 4294901760, %v303_v21 }
  0xb0   : > { %v248_v25 = vpop.xlane.xlu0 %247  ;;  %v316_v36 = vand.u32 4294901760, %v315_v26 }
  0xb1   : > { %v254_v27 = vmul.f32 0.00390625, %v248_v25  ;;  %v242_v28 = vpop.xlane.xlu1 %241  ;;  %v305_v29 = vsub.f32 %v303_v21, %v304_v23 }
  0xb2   : > { %v252_v30 = vmul.f32 0.00390625, %v242_v28  ;;  %v317_v42 = vsub.f32 %v315_v26, %v316_v36 }
  0xb3   : > { %v275_v31 = vand.u32 4294901760, %v254_v27  ;;  %v306_v32 = vand.u32 4294901760, %v305_v29 }
  0xb4   : > { %v279_v34 = vand.u32 4294901760, %v252_v30  ;;  %v318_v45 = vand.u32 4294901760, %v317_v42 }
  0xb5   : > { %v309_v35 = vsub.f32 %v254_v27, %v275_v31  ;;  %276 = vmatpush.msra.mxu0 %v275_v31  ;;  %307 = vmatpush.msra.mxu1 %v306_v32 }
  0xb6   : > { %v321_v37 = vsub.f32 %v252_v30, %v279_v34 }
  0xb7   : > { %278 = vmatpush.msra.mxu0 %v277_v22  ;;  %v310_v39 = vand.u32 4294901760, %v309_v35 }
  0xb8   : > { %v322_v40 = vand.u32 4294901760, %v321_v37 }
  0xb9   : > { %280 = vmatpush.msra.mxu0 %v279_v34  ;;  %v311_v41 = vsub.f32 %v309_v35, %v310_v39 }
  0xba   : > { %286 = vmatmul.f32.vlgmr.msra.gmra.mxu0 %v285_v38  ;;  %v323_v44 = vsub.f32 %v321_v37, %v322_v40 }
  0xbb   : > { %345 = vmatpush.msrb.mxu0 %v303_v21  ;;  %v312_v43 = vand.u32 4294901760, %v311_v41 }
  0xbc   : > { %v324_v46 = vand.u32 4294901760, %v323_v44 }
  0xbd   : > { %348 = vmatpush.msrb.mxu0 %v309_v35  ;;  %313 = vmatpush.msra.mxu1 %v312_v43 }
  0xbf   : > { %351 = vmatpush.msrb.mxu0 %v315_v26  ;;  %319 = vmatpush.msra.mxu1 %v318_v45 }
  0xc1   : > { %354 = vmatpush.msrb.mxu0 %v321_v37  ;;  %325 = vmatpush.msra.mxu1 %v324_v46 }
  0xc2   : > { %327 = vmatmul.f32.vlgmr.msra.gmra.mxu1 %v281_v14  ;;  %357 = vmatmul.f32.vlgmr.msrb.gmra.mxu0 %v282_v20  ;;  %v450_v20 = vld [vmem:[%s1610_s2 + $0x18] sm:$0xff] }
  0xc3   : > { %403 = vmatpush.msra.mxu0 %v304_v23  ;;  %374 = vmatpush.msrb.mxu1 %v273_v19  ;;  %v502_v23 = vsub.f32 %v459_v13, %v501_v18  ;;  %v462_v25 = vsel %vm451_vm1, %v450_v20, 0 }
  0xc4   : > { %v509_v29 = vand.u32 4294901760, %v462_v25 }
  0xc5   : > { %407 = vmatpush.msra.mxu0 %v310_v39  ;;  %376 = vmatpush.msrb.mxu1 %v275_v31  ;;  %v503_v28 = vand.u32 4294901760, %v502_v23 }
  0xc6   : > { %v510_v32 = vsub.f32 %v462_v25, %v509_v29 }
  0xc7   : > { %411 = vmatpush.msra.mxu0 %v316_v36  ;;  %378 = vmatpush.msrb.mxu1 %v277_v22 }
  0xc9   : > { %415 = vmatpush.msra.mxu0 %v322_v40  ;;  %380 = vmatpush.msrb.mxu1 %v279_v34 }
  0xca   : > { %384 = vmatmul.f32.vlgmr.msrb.gmra.mxu1 %v283_v24  ;;  %417 = vmatmul.f32.vlgmr.msra.gmra.mxu0 %v281_v14 }
  0xcb   : > { %434 = vmatpush.msra.mxu1 %v273_v19 }
  0xcd   : > { %436 = vmatpush.msra.mxu1 %v275_v31  ;;  %v504_v31 = vsub.f32 %v502_v23, %v503_v28 }
  0xcf   : > { %438 = vmatpush.msra.mxu1 %v277_v22  ;;  %v496_v22 = vsub.f32 %v494_v12, %v495_v17  ;;  %v505_v33 = vand.u32 4294901760, %v504_v31 }
  0xd1   : > { %440 = vmatpush.msra.mxu1 %v279_v34  ;;  %v497_v27 = vand.u32 4294901760, %v496_v22  ;;  %v511_v34 = vand.u32 4294901760, %v510_v32 }
  0xd2   : > { %442 = vmatmul.f32.vlgmr.msra.gmra.mxu1 %v281_v14 }
  0xd3   : > { %v512_v35 = vsub.f32 %v510_v32, %v511_v34 }
  0xd5   : > { %v513_v36 = vand.u32 4294901760, %v512_v35 }
 0x137   : > { %v287_v47 = vpop.f32.mrf.mxu0 }
 0x13f   : > { %v328_v48 = vpop.f32.mrf.mxu1  ;;  %v358_v50 = vpop.f32.mrf.mxu0 }
 0x140   : > { %v329_v52 = vadd.f32 %v328_v48, %v287_v47 }
 0x142   : > { %v359_v56 = vadd.f32 %v358_v50, %v329_v52 }
 0x147   : > { %v385_v55 = vpop.f32.mrf.mxu1  ;;  %v418_v60 = vpop.f32.mrf.mxu0 }
 0x148   : > { %v386_v59 = vadd.f32 %v385_v55, %v359_v56 }
 0x14a   : > { %v419_v63 = vadd.f32 %v418_v60, %v386_v59 }
 0x14f   : > { %v443_v5 = vpop.f32.mrf.mxu1 }
 0x150   : > { %v444_v10 = vadd.f32 %v443_v5, %v419_v63 }
 0x152   : > { %v446_v14 = vmax.f32 %v444_v10, 0.0 }
 0x154   : > { %v466_v15 = vsel %vm464_vm2, %v446_v14, 0 }
 0x155   : > { %v483_v19 = vand.u32 4294901760, %v466_v15 }
 0x157   : > { %v534_v21 = vsub.f32 %v466_v15, %v483_v19  ;;  %484 = vmatpush.msra.mxu2 %v483_v19  ;;  %611 = vmatpush.msrb.mxu1 %v483_v19 }
 0x158   : > { %490 = vmatmul.f32.vlgmr.msra.gmra.mxu2 %v489_v16  ;;  %615 = vmatmul.f32.vlgmr.msrb.gmra.mxu1 %v487_v61 }
 0x159   : > { %573 = vmatpush.msrb.mxu0 %v534_v21  ;;  %v535_v24 = vand.u32 4294901760, %v534_v21 }
 0x15a   : > { %576 = vmatmul.f32.vlgmr.msrb.gmra.mxu0 %v486_v57 }
 0x15b   : > { %655 = vmatpush.msrb.mxu2 %v535_v24  ;;  %v536_v26 = vsub.f32 %v534_v21, %v535_v24 }
 0x15d   : > { %v537_v30 = vand.u32 4294901760, %v536_v26 }
 0x15f   : > { %538 = vmatpush.msra.mxu3 %v537_v30 }
 0x160   : > { %498 = vmatmul.f32.gmra.mxu2 %v497_v27  ;;  %540 = vmatmul.f32.vlgmr.msra.gmra.mxu3 %v1516_v53 }
 0x161   : > { %689 = vmatpush.msrb.mxu3 %v483_v19  ;;  %621 = vmatmul.f32.gmra.mxu1 %v495_v17 }
 0x162   : > { %581 = vmatmul.f32.gmra.mxu0 %v494_v12 }
 0x168   : > { %506 = vmatmul.f32.gmra.mxu2 %v505_v33  ;;  %544 = vmatmul.f32.gmra.mxu3 %v493_v62 }
 0x169   : > { %627 = vmatmul.f32.gmra.mxu1 %v503_v28 }
 0x16a   : > { %586 = vmatmul.f32.gmra.mxu0 %v502_v23 }
 0x170   : > { %514 = vmatmul.f32.gmra.mxu2 %v513_v36  ;;  %548 = vmatmul.f32.gmra.mxu3 %v501_v18 }
 0x171   : > { %633 = vmatmul.f32.gmra.mxu1 %v511_v34 }
 0x172   : > { %591 = vmatmul.f32.gmra.mxu0 %v510_v32 }
 0x178   : > { %552 = vmatmul.f32.gmra.mxu3 %v509_v29  ;;  %657 = vmatmul.f32.vlgmr.msrb.gmra.mxu2 %v1516_v53 }
 0x180   : > { %661 = vmatmul.f32.gmra.mxu2 %v493_v62  ;;  %691 = vmatmul.f32.vlgmr.msrb.gmra.mxu3 %v1516_v53 }
 0x188   : > { %665 = vmatmul.f32.gmra.mxu2 %v501_v18  ;;  %695 = vmatmul.f32.gmra.mxu3 %v493_v62 }
 0x190   : > { %669 = vmatmul.f32.gmra.mxu2 %v509_v29  ;;  %699 = vmatmul.f32.gmra.mxu3 %v501_v18 }
 0x198   : > { %703 = vmatmul.f32.gmra.mxu3 %v509_v29 }
 0x1d5   : > { %v616_v45 = vpop.f32.mrf.mxu1 }
 0x1d7   : > { %v577_v42 = vpop.f32.mrf.mxu0 }
 0x1db   : > { %v491_v37 = vpop.f32.mrf.mxu2 }
 0x1de   : > { %v622_v53 = vpop.f32.mrf.mxu1 }
 0x1df   : > { %v582_v50 = vpop.f32.mrf.mxu0 }
 0x1e3   : > { %v499_v38 = vpop.f32.mrf.mxu2  ;;  %v541_v39 = vpop.f32.mrf.mxu3 }
 0x1e4   : > { %v542_v46 = vadd.f32 %v541_v39, %v491_v37 }
 0x1e6   : > { %v578_v49 = vadd.f32 %v577_v42, %v542_v46  ;;  %v628_v3 = vpop.f32.mrf.mxu1 }
 0x1e7   : > { %v587_v60 = vpop.f32.mrf.mxu0 }
 0x1e8   : > { %v617_v51 = vadd.f32 %v616_v45, %v578_v49  ;;  %v1536_v45 = vstv %s1112_s12 }
 0x1eb   : > { %v507_v40 = vpop.f32.mrf.mxu2  ;;  %v545_v41 = vpop.f32.mrf.mxu3 }
 0x1ec   : > { %v546_v52 = vadd.f32 %v545_v41, %v499_v38  ;;  %v1346_v38 = vmov 0  }
 0x1ed   : > { %1187 = vset.pattern.permute.xlu2 %v1346_v38  ;;  %1188 = vset.pattern.permute.xlu0 %v1346_v38 }
 0x1ee   : > { %v583_v57 = vadd.f32 %v582_v50, %v546_v52  ;;  %v634_v23 = vpop.f32.mrf.mxu1  ;;  %1189 = vset.pattern.permute.xlu1 %v1346_v38  ;;  %v1538_v50 = vstv %s783_s7 }
 0x1ef   : > { %v592_v18 = vpop.f32.mrf.mxu0 }
 0x1f0   : > { %v623_v61 = vadd.f32 %v622_v53, %v583_v57 }
 0x1f3   : > { %v515_v43 = vpop.f32.mrf.mxu2  ;;  %v549_v44 = vpop.f32.mrf.mxu3 }
 0x1f4   : > { %v550_v62 = vadd.f32 %v549_v44, %v507_v40  ;;  %v1534_v44 = vstv %s1111_s9 }
 0x1f6   : > { %v588_v10 = vadd.f32 %v587_v60, %v550_v62 }
 0x1f8   : > { %v629_v16 = vadd.f32 %v628_v3, %v588_v10 }
 0x1fb   : > { %v553_v47 = vpop.f32.mrf.mxu3  ;;  %v658_v48 = vpop.f32.mrf.mxu2 }
 0x1fc   : > { %v659_v54 = vadd.f32 %v658_v48, %v617_v51  ;;  %v554_v17 = vadd.f32 %v553_v47, %v515_v43 }
 0x1fe   : > { %v593_v21 = vadd.f32 %v592_v18, %v554_v17 }
 0x200   : > { %v635_v29 = vadd.f32 %v634_v23, %v593_v21 }
 0x203   : > { %v662_v55 = vpop.f32.mrf.mxu2  ;;  %v692_v56 = vpop.f32.mrf.mxu3 }
 0x204   : > { %v693_v58 = vadd.f32 %v692_v56, %v659_v54  ;;  %v663_v63 = vadd.f32 %v662_v55, %v623_v61  ;;  %v785_v54 = vmul.f32 0.0, %v1538_v50 }
 0x206   : > { %v1107_v59 = vmul.f32 -1.442695, %v693_v58 }
 0x208   : > { %1190 = vpow2.f32 %v1107_v59 }
 0x20b   : > { %v696_v5 = vpop.f32.mrf.mxu3  ;;  %v666_v12 = vpop.f32.mrf.mxu2 }
 0x20c   : > { %v697_v11 = vadd.f32 %v696_v5, %v663_v63  ;;  %v667_v19 = vadd.f32 %v666_v12, %v629_v16 }
 0x20e   : > { %v1191_v13 = vpop.eup %1190  ;;  %v1108_v14 = vmul.f32 -1.442695, %v697_v11 }
 0x20f   : > { %v719_v15 = vadd.f32 1.0, %v1191_v13 }
 0x210   : > { %1192 = vpow2.f32 %v1108_v14 }
 0x211   : > { %1194 = vrcp.f32 %v719_v15  ;;  %v732_v33 = vand.u32 2147483647, %v719_v15  ;;  %v734_v34 = vand.u32 2147483648, %v719_v15  ;;  %vm728_vm4 = vweird.f32 %v719_v15 }
 0x213   : > { %v700_v20 = vpop.f32.mrf.mxu3  ;;  %v670_v28 = vpop.f32.mrf.mxu2  ;;  %v735_v43 = vor.u32 1.1754944e-38, %v734_v34  ;;  %vm733_vm6 = vcmp.eq.f32.partialorder %v732_v33, 8.507059e+37 }
 0x214   : > { %v701_v22 = vadd.f32 %v700_v20, %v667_v19  ;;  %v671_v32 = vadd.f32 %v670_v28, %v635_v29 }
 0x216   : > { %v1193_v24 = vpop.eup %1192  ;;  %v1109_v25 = vmul.f32 -1.442695, %v701_v22 }
 0x217   : > { %v1195_v26 = vpop.eup %1194  ;;  %v720_v27 = vadd.f32 1.0, %v1193_v24 }
 0x218   : > { %v724_v30 = vmul.f32 %v1195_v26, %v719_v15  ;;  %1196 = vpow2.f32 %v1109_v25  ;;  %vm729_vm3 = vweird.f32 %v1195_v26 }
 0x219   : > { %1198 = vrcp.f32 %v720_v27  ;;  %vm730_vm5 = vmor %vm728_vm4, %vm729_vm3  ;;  %v749_v55 = vand.u32 2147483648, %v720_v27  ;;  %v747_v58 = vand.u32 2147483647, %v720_v27  ;;  %vm743_vm8 = vweird.f32 %v720_v27 }
 0x21a   : > { %v725_v31 = vsub.f32 1.0, %v724_v30 }
 0x21b   : > { %v704_v35 = vpop.f32.mrf.mxu3  ;;  %v750_v3 = vor.u32 1.1754944e-38, %v749_v55  ;;  %vm748_vm10 = vcmp.eq.f32.partialorder %v747_v58, 8.507059e+37 }
 0x21c   : > { %v726_v36 = vmul.f32 %v1195_v26, %v725_v31  ;;  %v705_v37 = vadd.f32 %v704_v35, %v671_v32 }
 0x21e   : > { %v1197_v39 = vpop.eup %1196  ;;  %v727_v40 = vadd.f32 %v1195_v26, %v726_v36  ;;  %v1110_v41 = vmul.f32 -1.442695, %v705_v37 }
 0x21f   : > { %v1199_v42 = vpop.eup %1198  ;;  %v721_v46 = vadd.f32 1.0, %v1197_v39 }
 0x220   : > { %v731_v47 = vsel %vm730_vm5, %v1195_v26, %v727_v40  ;;  %v739_v48 = vmul.f32 %v1199_v42, %v720_v27  ;;  %1200 = vpow2.f32 %v1110_v41  ;;  %vm744_vm7 = vweird.f32 %v1199_v42 }
 0x221   : > { %v736_v49 = vsel %vm733_vm6, %v735_v43, %v731_v47  ;;  %1202 = vrcp.f32 %v721_v46  ;;  %vm745_vm9 = vmor %vm743_vm8, %vm744_vm7  ;;  %v762_v17 = vand.u32 2147483647, %v721_v46  ;;  %v764_v18 = vand.u32 2147483648, %v721_v46 }
 0x222   : > { %v792_v51 = vmul.f32 %v1534_v44, %v736_v49  ;;  %v820_v52 = vmul.f32 %v1536_v45, %v736_v49  ;;  %v740_v53 = vsub.f32 1.0, %v739_v48  ;;  %v786_v23 = vmul.f32 %v1538_v50, %v736_v49 }
 0x223   : > { %vm758_vm14 = vweird.f32 %v721_v46  ;;  %v765_v27 = vor.u32 1.1754944e-38, %v764_v18  ;;  %vm763_vm0 = vcmp.eq.f32.partialorder %v762_v17, 8.507059e+37 }
 0x224   : > { %v801_v56 = vrot.slane %v792_v51, 1  ;;  %v741_v57 = vmul.f32 %v1199_v42, %v740_v53  ;;  %v831_v62 = vrot.slane %v820_v52, 2  ;;  %v824_v52 = vmul.f32 0.0, %v1536_v45 }
 0x226   : > { %v1201_v59 = vpop.eup %1200  ;;  %v742_v60 = vadd.f32 %v1199_v42, %v741_v57  ;;  %v813_v61 = vadd.f32 %v801_v56, %v785_v54 }
 0x227   : > { %v1203_v63 = vpop.eup %1202  ;;  %v722_v5 = vadd.f32 1.0, %v1201_v59 }
 0x228   : > { %v746_v10 = vsel %vm745_vm9, %v1199_v42, %v742_v60  ;;  %v754_v11 = vmul.f32 %v1203_v63, %v721_v46  ;;  %v845_v12 = vadd.f32 %v831_v62, %v813_v61  ;;  %vm759_vm12 = vweird.f32 %v1203_v63 }
 0x229   : > { %v751_v13 = vsel %vm748_vm10, %v750_v3, %v746_v10  ;;  %1204 = vrcp.f32 %v722_v5  ;;  %vm760_vm15 = vmor %vm758_vm14, %vm759_vm12  ;;  %v777_v38 = vand.u32 2147483647, %v722_v5  ;;  %v779_v39 = vand.u32 2147483648, %v722_v5 }
 0x22a   : > { %v793_v14 = vmul.f32 %v1534_v44, %v751_v13  ;;  %v821_v15 = vmul.f32 %v1536_v45, %v751_v13  ;;  %v755_v16 = vsub.f32 1.0, %v754_v11  ;;  %v1113_v19 = vmul.f32 -1.442695, %v845_v12 }
 0x22b   : > { %v787_v47 = vmul.f32 %v1538_v50, %v751_v13  ;;  %vm773_vm2 = vweird.f32 %v722_v5  ;;  %v780_v49 = vor.u32 1.1754944e-38, %v779_v39  ;;  %vm778_vm4 = vcmp.eq.f32.partialorder %v777_v38, 8.507059e+37 }
 0x22c   : > { %v802_v20 = vrot.slane %v793_v14, 1  ;;  %v832_v21 = vrot.slane %v821_v15, 2  ;;  %v756_v22 = vmul.f32 %v1203_v63, %v755_v16  ;;  %1206 = vpow2.f32 %v1113_v19 }
 0x22d   : > { %v838_v61 = vrot.slane %v824_v52, 2 }
 0x22e   : > { %v757_v24 = vadd.f32 %v1203_v63, %v756_v22  ;;  %v803_v25 = vsel %vm800_vm11, %v801_v56, %v802_v20  ;;  %v833_v31 = vsel %vm830_vm13, %v831_v62, %v832_v21 }
 0x22f   : > { %v1205_v26 = vpop.eup %1204  ;;  %v814_v28 = vadd.f32 %v803_v25, %v786_v23 }
 0x230   : > { %v761_v29 = vsel %vm760_vm15, %v1203_v63, %v757_v24  ;;  %v769_v30 = vmul.f32 %v1205_v26, %v722_v5  ;;  %vm774_vm1 = vweird.f32 %v1205_v26 }
 0x231   : > { %v766_v32 = vsel %vm763_vm0, %v765_v27, %v761_v29  ;;  %v846_v33 = vadd.f32 %v833_v31, %v814_v28  ;;  %vm775_vm3 = vmor %vm773_vm2, %vm774_vm1 }
 0x232   : > { %v794_v34 = vmul.f32 %v1534_v44, %v766_v32  ;;  %v822_v35 = vmul.f32 %v1536_v45, %v766_v32  ;;  %v770_v36 = vsub.f32 1.0, %v769_v30  ;;  %v1207_v37 = vpop.eup %1206  ;;  %v788_v13 = vmul.f32 %v1538_v50, %v766_v32 }
 0x233   : > { %v1114_v40 = vmul.f32 -1.442695, %v846_v33  ;;  %v865_v43 = vadd.f32 1.0, %v1207_v37 }
 0x234   : > { %v804_v41 = vrot.slane %v794_v34, 1  ;;  %v771_v42 = vmul.f32 %v1205_v26, %v770_v36  ;;  %v834_v46 = vrot.slane %v822_v35, 2 }
 0x235   : > { %1208 = vpow2.f32 %v1114_v40  ;;  %v881_v16 = vand.u32 2147483648, %v865_v43  ;;  %vm875_vm6 = vweird.f32 %v865_v43 }
 0x236   : > { %v772_v48 = vadd.f32 %v1205_v26, %v771_v42  ;;  %1210 = vrcp.f32 %v865_v43  ;;  %v805_v51 = vsel %vm800_vm11, %v802_v20, %v804_v41  ;;  %v835_v56 = vsel %vm830_vm13, %v832_v21, %v834_v46 }
 0x237   : > { %v815_v54 = vadd.f32 %v805_v51, %v787_v47  ;;  %v882_v25 = vor.u32 1.1754944e-38, %v881_v16 }
 0x238   : > { %v776_v53 = vsel %vm775_vm3, %v1205_v26, %v772_v48 }
 0x239   : > { %v781_v55 = vsel %vm778_vm4, %v780_v49, %v776_v53  ;;  %v847_v59 = vadd.f32 %v835_v56, %v815_v54 }
 0x23a   : > { %v795_v57 = vmul.f32 %v1534_v44, %v781_v55  ;;  %v823_v58 = vmul.f32 %v1536_v45, %v781_v55  ;;  %v789_v11 = vmul.f32 %v1538_v50, %v781_v55  ;;  %v879_v45 = vand.u32 2147483647, %v865_v43 }
 0x23b   : > { %v1209_v60 = vpop.eup %1208  ;;  %v1115_v10 = vmul.f32 -1.442695, %v847_v59 }
 0x23c   : > { %v1211_v62 = vpop.eup %1210  ;;  %v806_v63 = vrot.slane %v795_v57, 1  ;;  %v836_v3 = vrot.slane %v823_v58, 2  ;;  %v866_v5 = vadd.f32 1.0, %v1209_v60  ;;  %vm880_vm8 = vcmp.eq.f32.partialorder %v879_v45, 8.507059e+37 }
 0x23d   : > { %v871_v12 = vmul.f32 %v1211_v62, %v865_v43  ;;  %vm876_vm5 = vweird.f32 %v1211_v62 }
 0x23e   : > { %1212 = vrcp.f32 %v866_v5  ;;  %v817_v15 = vadd.f32 %v806_v63, %v789_v11  ;;  %v839_v44 = vsel %vm830_vm13, %v836_v3, %v838_v61  ;;  %v807_v17 = vsel %vm800_vm11, %v804_v41, %v806_v63  ;;  %vm877_vm7 = vmor %vm875_vm6, %vm876_vm5 }
 0x23f   : > { %v872_v14 = vsub.f32 1.0, %v871_v12  ;;  %1214 = vpow2.f32 %v1115_v10  ;;  %v816_v20 = vadd.f32 %v807_v17, %v788_v13  ;;  %v837_v21 = vsel %vm830_vm13, %v834_v46, %v836_v3 }
 0x240   : > { %v849_v19 = vadd.f32 %v839_v44, %v817_v15  ;;  %v896_v33 = vand.u32 2147483648, %v866_v5  ;;  %v894_v35 = vand.u32 2147483647, %v866_v5  ;;  %vm890_vm10 = vweird.f32 %v866_v5 }
 0x241   : > { %v873_v18 = vmul.f32 %v1211_v62, %v872_v14  ;;  %v848_v50 = vadd.f32 %v837_v21, %v816_v20 }
 0x242   : > { %v1117_v23 = vmul.f32 -1.442695, %v849_v19  ;;  %v897_v38 = vor.u32 1.1754944e-38, %v896_v33  ;;  %vm895_vm12 = vcmp.eq.f32.partialorder %v894_v35, 8.507059e+37 }
 0x243   : > { %v874_v22 = vadd.f32 %v1211_v62, %v873_v18  ;;  %v1116_v31 = vmul.f32 -1.442695, %v848_v50 }
 0x244   : > { %v1213_v24 = vpop.eup %1212  ;;  %1216 = vpow2.f32 %v1117_v23 }
 0x245   : > { %v1215_v26 = vpop.eup %1214  ;;  %v878_v27 = vsel %vm877_vm7, %v1211_v62, %v874_v22  ;;  %v886_v28 = vmul.f32 %v1213_v24, %v866_v5  ;;  %vm891_vm9 = vweird.f32 %v1213_v24 }
 0x246   : > { %v883_v29 = vsel %vm880_vm8, %v882_v25, %v878_v27  ;;  %v867_v30 = vadd.f32 1.0, %v1215_v26  ;;  %vm892_vm11 = vmor %vm890_vm10, %vm891_vm9  ;;  %vm965_vm9 = vcmask 1040384  }
 0x247   : > { %947 = vperm.xlu2 %1187, %v883_v29   ;;  %v887_v32 = vsub.f32 1.0, %v886_v28 }
 0x248   : > { %1218 = vrcp.f32 %v867_v30  ;;  %v911_v49 = vand.u32 2147483648, %v867_v30  ;;  %v909_v52 = vand.u32 2147483647, %v867_v30  ;;  %vm905_vm14 = vweird.f32 %v867_v30 }
 0x249   : > { %v888_v34 = vmul.f32 %v1213_v24, %v887_v32  ;;  %1220 = vpow2.f32 %v1116_v31 }
 0x24a   : > { %v1217_v36 = vpop.eup %1216  ;;  %v912_v56 = vor.u32 1.1754944e-38, %v911_v49  ;;  %vm910_vm0 = vcmp.eq.f32.partialorder %v909_v52, 8.507059e+37 }
 0x24b   : > { %v889_v37 = vadd.f32 %v1213_v24, %v888_v34  ;;  %v869_v39 = vadd.f32 1.0, %v1217_v36 }
 0x24d   : > { %v893_v40 = vsel %vm892_vm11, %v1213_v24, %v889_v37  ;;  %1222 = vrcp.f32 %v869_v39  ;;  %v939_v61 = vand.u32 2147483647, %v869_v39  ;;  %v941_v62 = vand.u32 2147483648, %v869_v39 }
 0x24e   : > { %v1219_v41 = vpop.eup %1218  ;;  %v898_v42 = vsel %vm895_vm12, %v897_v38, %v893_v40  ;;  %vm935_vm2 = vweird.f32 %v869_v39 }
 0x24f   : > { %v1221_v43 = vpop.eup %1220  ;;  %951 = vperm.xlu2 %1187, %v898_v42   ;;  %v901_v46 = vmul.f32 %v1219_v41, %v867_v30  ;;  %vm906_vm13 = vweird.f32 %v1219_v41  ;;  %vm940_vm4 = vcmp.eq.f32.partialorder %v939_v61, 8.507059e+37  ;;  %v942_v11 = vor.u32 1.1754944e-38, %v941_v62 }
 0x250   : > { %v868_v47 = vadd.f32 1.0, %v1221_v43  ;;  %vm907_vm15 = vmor %vm905_vm14, %vm906_vm13 }
 0x251   : > { %v902_v48 = vsub.f32 1.0, %v901_v46 }
 0x252   : > { %1224 = vrcp.f32 %v868_v47  ;;  %v926_v12 = vand.u32 2147483648, %v868_v47  ;;  %v924_v15 = vand.u32 2147483647, %v868_v47  ;;  %vm920_vm6 = vweird.f32 %v868_v47 }
 0x253   : > { %v903_v51 = vmul.f32 %v1219_v41, %v902_v48  ;;  %v1223_v53 = vpop.eup %1222 }
 0x254   : > { %v931_v55 = vmul.f32 %v1223_v53, %v869_v39  ;;  %vm936_vm1 = vweird.f32 %v1223_v53  ;;  %v927_v16 = vor.u32 1.1754944e-38, %v926_v12  ;;  %vm925_vm8 = vcmp.eq.f32.partialorder %v924_v15, 8.507059e+37 }
 0x255   : > { %v904_v54 = vadd.f32 %v1219_v41, %v903_v51  ;;  %vm937_vm3 = vmor %vm935_vm2, %vm936_vm1 }
 0x256   : > { %v932_v58 = vsub.f32 1.0, %v931_v55 }
 0x257   : > { %v908_v57 = vsel %vm907_vm15, %v1219_v41, %v904_v54 }
 0x258   : > { %v1225_v59 = vpop.eup %1224  ;;  %v913_v60 = vsel %vm910_vm0, %v912_v56, %v908_v57  ;;  %v933_v63 = vmul.f32 %v1223_v53, %v932_v58 }
 0x259   : > { %955 = vperm.xlu0 %1188, %v913_v60   ;;  %v916_v3 = vmul.f32 %v1225_v59, %v868_v47  ;;  %vm921_vm5 = vweird.f32 %v1225_v59 }
 0x25a   : > { %v934_v5 = vadd.f32 %v1223_v53, %v933_v63  ;;  %vm922_vm7 = vmor %vm920_vm6, %vm921_vm5 }
 0x25b   : > { %v917_v10 = vsub.f32 1.0, %v916_v3 }
 0x25c   : > { %v938_v13 = vsel %vm937_vm3, %v1223_v53, %v934_v5 }
 0x25d   : > { %v918_v14 = vmul.f32 %v1225_v59, %v917_v10  ;;  %v943_v44 = vsel %vm940_vm4, %v942_v11, %v938_v13 }
 0x25e   : > { %963 = vperm.xlu2 %1187, %v943_v44  }
 0x25f   : > { %v919_v45 = vadd.f32 %v1225_v59, %v918_v14 }
 0x261   : > { %v923_v17 = vsel %vm922_vm7, %v1225_v59, %v919_v45 }
 0x262   : > { %v928_v18 = vsel %vm925_vm8, %v927_v16, %v923_v17 }
 0x263   : > { %959 = vperm.xlu1 %1189, %v928_v18  }
 0x2a1   : > { %v948_v19 = vpop.permute.xlu2 %947 }
 0x2a2   : > { %v966_v21 = vrot.slane %v948_v19, 7 }
 0x2a9   : > { %v952_v20 = vpop.permute.xlu2 %951 }
 0x2aa   : > { %v967_v22 = vrot.slane %v952_v20, 7 }
 0x2ac   : > { %v968_v23 = vsel %vm965_vm9, %v966_v21, %v967_v22 }
 0x2ad   : > { %v979_v50 = vmul.f32 %v968_v23, %v1501_v8  ;;  %v980_v24 = vmul.f32 %v968_v23, %v1503_v9 }
 0x2af   : > { %987 = vst [vmem:[%s231_s11] sm:$0xff] %v979_v50 }
 0x2b0   : > { %988 = vst [vmem:[%s231_s11 + $0x8] sm:$0xff] %v980_v24 }
 0x2b8   : > { %v964_v30 = vpop.permute.xlu2 %963 }
 0x2b9   : > { %v973_v8 = vrot.slane %v964_v30, 7 }
 0x2cb   : > { %v956_v25 = vpop.permute.xlu0 %955 }
 0x2cc   : > { %v969_v26 = vrot.slane %v956_v25, 7 }
 0x2ce   : > { %v970_v27 = vsel %vm965_vm9, %v967_v22, %v969_v26 }
 0x2cf   : > { %v981_v28 = vmul.f32 %v970_v27, %v1489_v2  ;;  %v982_v29 = vmul.f32 %v970_v27, %v1493_v4 }
 0x2d1   : > { %989 = vst [vmem:[%s231_s11 + $0x10] sm:$0xff] %v981_v28 }
 0x2d2   : > { %990 = vst [vmem:[%s231_s11 + $0x18] sm:$0xff] %v982_v29 }
 0x2d5   : > { %v960_v31 = vpop.permute.xlu1 %959 }
 0x2d6   : > { %v971_v9 = vrot.slane %v960_v31, 7 }
 0x2d8   : > { %v972_v32 = vsel %vm965_vm9, %v969_v26, %v971_v9  ;;  %v974_v33 = vsel %vm965_vm9, %v971_v9, %v973_v8 }
 0x2d9   : > { %v983_v2 = vmul.f32 %v972_v32, %v1497_v6  ;;  %v984_v4 = vmul.f32 %v972_v32, %v1499_v7  ;;  %v985_v34 = vmul.f32 %v974_v33, %v1485_v0  ;;  %v986_v35 = vmul.f32 %v974_v33, %v1487_v1 }
 0x2db   : > { %991 = vst [vmem:[%s231_s11 + $0x20] sm:$0xff] %v983_v2 }
 0x2dc   : > { %992 = vst [vmem:[%s231_s11 + $0x28] sm:$0xff] %v984_v4 }
 0x2dd   : > { %993 = vst [vmem:[%s231_s11 + $0x30] sm:$0xff] %v985_v34 }
 0x2de   : > { %994 = vst [vmem:[%s231_s11 + $0x38] sm:$0xff] %v986_v35 }
 0x2df   : > { %1298 = shalt.err (!%p1295_p8)
}
 0x2e0   : > { %s1347_s14 = smov 256   ;;  %s1348_s9 = smov 16  }
 0x2e1   : > { %1131 = dma.vmem_to_hbm [thread:$0]  (%p1426_p11), %s1009_s3, 1024, %s1011_s8, %s996_s19, %s1347_s14, %s1347_s14, %s1348_s9  }
 0x2e2 PF: > { %s1025_s12 = sand.u32 1, %s1329_s15   ;;  %p1621_p9 = scmp.ge.s32.totalorder %s1341_s18, 2 }
 0x2e3   : > { %s1026_s7 = scalar_lea.sflag [#allocation4], %s1025_s12 }
 0x2e4   : > { %p1142_p10 = pnand %p1621_p9, %p1430_p12 }
 0x2e6   : > { %p1143_p1 = pneg %p1142_p10 }
 0x2e8   : > { %1324 = dma.done.wait (%p1143_p1), %s1026_s7, 1024  }
 0x2e9   : > { %1326 = vsyncadd (%p1143_p1), %s1026_s7, 4294966272  ;;  %p18_p2 = scmp.ge.s32.totalorder %s1399_s21, 4   ;;  %s1622_s15 = smov %s1333_s16 }
 0x2ea   : > { %s1623_s16 = smov %s1337_s17  ;;  %s1624_s17 = smov %s1411_s24 }
 0x2eb   : > { %s1625_s18 = smov %s1399_s21  ;;  %20 = sbr.rel (!%p18_p2) target bundleno = 8 (0x8), region = 86 }
 0x2f0   :  { %1032 = vsyncpa [#allocation3], 1 }
 0x2f1   :  { %1034 = vsyncpa [#allocation3 + $0x1], 1 }
 0x2f2   :  { %1035 = vsyncpa [#allocation4], 1 }
 0x2f3   :  { %1037 = vsyncpa [#allocation4 + $0x1], 1 }
 0x2f4   :  { %1038 = vsyncpa [#allocation5], 1 }
 0x2f5   :  { %1040 = vsyncpa [#allocation5 + $0x1], 1 }

</bundles_post_ra>
